<compile_context>
chip_gen: v6e
topology: v6e:2x2x1
jax: 0.10.0
libtpu: 0.0.40
codegen_flags: <defaults>
</compile_context>

<pallas_src>
import functools

import numpy as np
import jax
import jax.numpy as jnp
from jax.experimental import pallas as pl
from jax.experimental.pallas import tpu as pltpu

N_WIRES = 4
DIM = 2 ** N_WIRES  # 16


# ----------------------------------------------------------------------------------
# Quantum circuit (plain-JAX glue, batched closed form)
# TODO(synk): PennyLane qml.qnode has no Pallas equivalent; simulated analytically here.
# ----------------------------------------------------------------------------------
def _rx(t):
    c = jnp.cos(t / 2).astype(jnp.complex64)
    s = (-1j * jnp.sin(t / 2)).astype(jnp.complex64)
    return jnp.stack([jnp.stack([c, s]), jnp.stack([s, c])])


def _ry(t):
    c = jnp.cos(t / 2).astype(jnp.complex64)
    s = jnp.sin(t / 2).astype(jnp.complex64)
    return jnp.stack([jnp.stack([c, -s]), jnp.stack([s, c])])


def _rz(t):
    tc = t.astype(jnp.complex64)
    em = jnp.exp(-0.5j * tc)
    ep = jnp.exp(0.5j * tc)
    zero = jnp.zeros((), jnp.complex64)
    return jnp.stack([jnp.stack([em, zero]), jnp.stack([zero, ep])])


def _cnot_matrix_np(control, target):
    m = np.zeros((DIM, DIM), np.complex64)
    for i in range(DIM):
        bits = [(i >> (N_WIRES - 1 - w)) & 1 for w in range(N_WIRES)]
        if bits[control] == 1:
            bits[target] ^= 1
        j = sum(b << (N_WIRES - 1 - w) for w, b in enumerate(bits))
        m[j, i] = 1.0
    return m


_CNOT = {(c, t): jnp.asarray(_cnot_matrix_np(c, t))
         for c in range(N_WIRES) for t in range(N_WIRES) if c != t}

# PauliZ sign table: z[i, w] = +1 if wire w is |0> in basis state i else -1
_Z_SIGNS = jnp.asarray(
    [[1.0 - 2.0 * ((i >> (N_WIRES - 1 - w)) & 1) for w in range(N_WIRES)]
     for i in range(DIM)], jnp.float32)


def entangling_layers_unitary(weights):
    """StronglyEntanglingLayers unitary (data-independent), (16, 16) complex64."""
    n_layers = weights.shape[0]
    U = jnp.eye(DIM, dtype=jnp.complex64)
    for l in range(n_layers):
        gates = []
        for w in range(N_WIRES):
            phi, theta, omega = weights[l, w, 0], weights[l, w, 1], weights[l, w, 2]
            gates.append(_rz(omega) @ _ry(theta) @ _rz(phi))  # qml.Rot
        u_rot = jnp.kron(jnp.kron(gates[0], gates[1]), jnp.kron(gates[2], gates[3]))
        U = u_rot @ U
        r = l % (N_WIRES - 1) + 1  # PennyLane default ranges
        for w in range(N_WIRES):
            U = _CNOT[(w, (w + r) % N_WIRES)] @ U
    return U


def quantum_feature_map(x, weights):
    """x: (B, 4) angles -> (B, 4) PauliZ expvals.  Two batched ops instead of a vmapped walk."""
    half = 0.5 * x
    c = jnp.cos(half).astype(jnp.complex64)            # (B, 4)
    s = jnp.sin(half).astype(jnp.complex64) * (-1j)    # (B, 4)
    q = jnp.stack([c, s], axis=-1)                     # (B, 4, 2): RX(x_w)|0> per wire
    psi = jnp.einsum('bi,bj,bk,bl->bijkl', q[:, 0], q[:, 1], q[:, 2], q[:, 3])
    psi = psi.reshape(-1, DIM)                         # (B, 16) embedded product states
    U = entangling_layers_unitary(weights)             # (16, 16), weights-only
    out = psi @ U.T                                    # (B, 16) final statevectors
    probs = jnp.abs(out) ** 2                          # (B, 16)
    return (probs @ _Z_SIGNS).astype(jnp.float32)      # (B, 4) expvals


# Per-sample statevector simulator (used only as a correctness cross-check in __main__).
def _apply_single(state, gate, wire):
    psi = state.reshape((2,) * N_WIRES)
    psi = jnp.tensordot(gate, psi, axes=([1], [wire]))
    psi = jnp.moveaxis(psi, 0, wire)
    return psi.reshape(-1)


def _apply_cnot(state, control, target):
    psi = state.reshape((2,) * N_WIRES)
    s0 = jax.lax.index_in_dim(psi, 0, axis=control, keepdims=False)
    s1 = jax.lax.index_in_dim(psi, 1, axis=control, keepdims=False)
    t_ax = target - (1 if target > control else 0)
    s1 = jnp.flip(s1, axis=t_ax)  # Pauli-X on target when control == 1
    psi = jnp.stack([s0, s1], axis=control)
    return psi.reshape(-1)


def quantum_conv_circuit_ref(x, weights):
    """Reference per-sample simulation: x (4,) angles -> (4,) PauliZ expvals."""
    state = jnp.zeros((DIM,), jnp.complex64).at[0].set(1.0)
    for w in range(N_WIRES):                                   # AngleEmbedding (RX)
        state = _apply_single(state, _rx(x[w]), w)
    n_layers = weights.shape[0]
    for l in range(n_layers):                                  # StronglyEntanglingLayers
        for w in range(N_WIRES):
            phi, theta, omega = weights[l, w, 0], weights[l, w, 1], weights[l, w, 2]
            state = _apply_single(state, _rz(omega) @ _ry(theta) @ _rz(phi), w)
        r = l % (N_WIRES - 1) + 1
        for w in range(N_WIRES):
            state = _apply_cnot(state, w, (w + r) % N_WIRES)
    probs = (jnp.abs(state) ** 2).reshape((2,) * N_WIRES)
    expvals = [
        jnp.sum(jnp.take(probs, 0, axis=w)) - jnp.sum(jnp.take(probs, 1, axis=w))
        for w in range(N_WIRES)
    ]
    return jnp.stack(expvals).astype(jnp.float32)


# ----------------------------------------------------------------------------------
# Pallas kernel: fc1(VPU) -> relu -> fc2(MXU) -> relu -> fc3 -> 2-class softmax (sigmoid form)
# ----------------------------------------------------------------------------------
def mlp_softmax_kernel(q_ref, w1_ref, b1_ref, w2_ref, b2_ref, wd_ref, bd_ref, o_ref):
    x = q_ref[...]                                      # (TB, 4)
    w1 = w1_ref[...]                                    # (4, 64)

    # fc1: K=4 contraction done on the VPU as 4 broadcast multiply-adds (MXU not worth it).
    h = b1_ref[...] + x[:, 0:1] * w1[0:1, :]
    h = h + x[:, 1:2] * w1[1:2, :]
    h = h + x[:, 2:3] * w1[2:3, :]
    h = h + x[:, 3:4] * w1[3:4, :]
    h = jnp.maximum(h, 0.0)                             # (TB, 64) f32

    # fc2: MXU, bf16 operands / f32 accumulation (native fast path on v5e/v6e/v7x).
    h = jnp.dot(h.astype(jnp.bfloat16), w2_ref[...].astype(jnp.bfloat16),
                preferred_element_type=jnp.float32) + b2_ref[...]
    h = jnp.maximum(h, 0.0)                             # (TB, 32) f32

    # fc3 + softmax over 2 classes == sigmoid of the logit difference (stable form).
    d = jnp.dot(h.astype(jnp.bfloat16), wd_ref[...].astype(jnp.bfloat16),
                preferred_element_type=jnp.float32) + bd_ref[...]   # (TB, 1)
    e = jnp.exp(-jnp.abs(d))                            # never overflows
    inv = pl.reciprocal(1.0 + e, approx=False)          # EUP is otherwise idle -> exact is free
    p1 = jnp.where(d >= 0, inv, e * inv)                # sigmoid(d)
    p0 = 1.0 - p1                                       # rows sum to 1 by construction

    # Narrow (TB, 2) output: two masked column stores, no padded lanes written back to HBM.
    o_ref[:, 0:1] = p0.astype(o_ref.dtype)
    o_ref[:, 1:2] = p1.astype(o_ref.dtype)


def mlp_pallas(q_out, w1_t, b1, w2_t, b2, w_diff, b_diff):
    batch = q_out.shape[0]
    # >= 2 grid steps whenever batch permits (so ("parallel",) can shard across v7x's 2 TCs),
    # big tiles (up to 4096 rows) to amortize ~0.35us/step overhead; VMEM stays far under
    # budget on all generations.
    tile_b = min(4096, max(8, ((pl.cdiv(batch, 2) + 7) // 8) * 8))
    grid = (pl.cdiv(batch, tile_b),)

    const2 = lambda i: (0, 0)  # weights/biases stay VMEM-resident across grid steps
    in_specs = [
        pl.BlockSpec((tile_b, 4), lambda i: (i, 0)),   # activation tile (pipelined)
        pl.BlockSpec((4, 64), const2),                 # W1^T
        pl.BlockSpec((1, 64), const2),                 # b1
        pl.BlockSpec((64, 32), const2),                # W2^T
        pl.BlockSpec((1, 32), const2),                 # b2
        pl.BlockSpec((32, 1), const2),                 # W3[1]-W3[0]
        pl.BlockSpec((1, 1), const2),                  # b3[1]-b3[0]
    ]
    out_specs = pl.BlockSpec((tile_b, 2), lambda i: (i, 0))

    weight_bytes = (4 * 64 + 64 + 64 * 32 + 32 + 32 + 1) * 4
    cost = pl.CostEstimate(
        flops=2 * batch * (4 * 64 + 64 * 32 + 32 * 1),
        transcendentals=2 * batch,
        bytes_accessed=batch * (4 * 4 + 2 * 4) + weight_bytes,
    )

    return pl.pallas_call(
        mlp_softmax_kernel,
        out_shape=jax.ShapeDtypeStruct((batch, 2), jnp.float32),
        grid_spec=pltpu.PrefetchScalarGridSpec(
            num_scalar_prefetch=0,
            grid=grid,
            in_specs=in_specs,
            out_specs=out_specs,
        ),
        compiler_params=pltpu.CompilerParams(
            dimension_semantics=("parallel",),        # shard batch across TCs on v7x
            vmem_limit_bytes=48 * 1024 * 1024,
        ),
        cost_estimate=cost,
    )(q_out, w1_t, b1, w2_t, b2, w_diff, b_diff)


# ----------------------------------------------------------------------------------
# Parameter init (deterministic, PyTorch-like shapes)
# ----------------------------------------------------------------------------------
def init_params(key):
    ks = jax.random.split(key, 7)
    quantum_weights = 0.01 * jax.random.normal(ks[0], (3, 4, 3), jnp.float32)

    def linear(kw, kb, fan_in, fan_out):
        bound = 1.0 / (fan_in ** 0.5)
        W = jax.random.uniform(kw, (fan_out, fan_in), jnp.float32, -bound, bound)
        b = jax.random.uniform(kb, (fan_out,), jnp.float32, -bound, bound)
        return W, b

    W1, b1 = linear(ks[1], ks[2], 4, 64)
    W2, b2 = linear(ks[3], ks[4], 64, 32)
    W3, b3 = linear(ks[5], ks[6], 32, 2)
    return quantum_weights, W1, b1, W2, b2, W3, b3


@jax.jit
def quantum_neural_net_forward(x, params):
    qw, W1, b1, W2, b2, W3, b3 = params
    # quantum feature map: (B, 4) angles -> (B, 4) PauliZ expvals (batched closed form)
    q_out = quantum_feature_map(x, qw)
    # 2-class softmax == sigmoid of the logit difference: fold fc3 into (32,1) + scalar
    w_diff = (W3[1] - W3[0]).reshape(32, 1)
    b_diff = (b3[1] - b3[0]).reshape(1, 1)
    return mlp_pallas(
        q_out,
        W1.T, b1.reshape(1, -1),
        W2.T, b2.reshape(1, -1),
        w_diff, b_diff,
    )


def mlp_reference(q_out, W1, b1, W2, b2, W3, b3):
    h = jnp.maximum(q_out @ W1.T + b1, 0.0)
    h = jnp.maximum(h @ W2.T + b2, 0.0)
    logits = h @ W3.T + b3
    return jax.nn.softmax(logits, axis=-1)


if __name__ == "__main__":
    key = jax.random.PRNGKey(0)
    k_param, k_x = jax.random.split(key)
    params = init_params(k_param)

    batch = 8
    x = jax.random.normal(k_x, (batch, 4), jnp.float32)  # 4 embedding angles per sample

    probs = quantum_neural_net_forward(x, params)
    probs = jax.block_until_ready(probs)

    assert probs.shape == (batch, 2)
    assert bool(jnp.all(jnp.isfinite(probs)))
    assert bool(jnp.allclose(jnp.sum(probs, axis=1), 1.0, atol=1e-5))

    qw, W1, b1, W2, b2, W3, b3 = params

    # cross-check: batched closed-form feature map vs per-sample statevector simulation
    q_fast = quantum_feature_map(x, qw)
    q_ref = jax.vmap(functools.partial(quantum_conv_circuit_ref, weights=qw))(x)
    assert bool(jnp.allclose(q_fast, q_ref, atol=1e-5))

    # loose reference check for the kernel (bf16 MXU operands in-kernel -> small tolerance)
    ref = mlp_reference(q_ref.astype(jnp.float32), W1, b1, W2, b2, W3, b3)
    assert bool(jnp.allclose(probs, ref, atol=1e-2))

    print("KERNEL_OK")
</pallas_src>

<mosaic_0001>
module attributes {stable_mosaic.version = 11 : i64} {
  func.func @mlp_softmax_kernel(%arg0: i32, %arg1: memref<8x4xf32, #tpu.memory_space<vmem>>, %arg2: memref<4x64xf32, #tpu.memory_space<vmem>>, %arg3: memref<1x64xf32, #tpu.memory_space<vmem>>, %arg4: memref<64x32xf32, #tpu.memory_space<vmem>>, %arg5: memref<1x32xf32, #tpu.memory_space<vmem>>, %arg6: memref<32x1xf32, #tpu.memory_space<vmem>>, %arg7: memref<1x1xf32, #tpu.memory_space<vmem>>, %arg8: memref<8x2xf32, #tpu.memory_space<vmem>>) attributes {dimension_semantics = [#tpu.dimension_semantics<parallel>], iteration_bounds = array<i64: 1>, scalar_prefetch = 0 : i64, scratch_operands = 0 : i64, tpu.core_type = #tpu.core_type<tc>, window_params = [{transform_indices = @transform_0, window_bounds = array<i64: 8, 4>}, {pipeline_mode = #tpu.pipeline_mode<synchronous>, transform_indices = @transform_1, window_bounds = array<i64: 4, 64>}, {pipeline_mode = #tpu.pipeline_mode<synchronous>, transform_indices = @transform_2, window_bounds = array<i64: 1, 64>}, {pipeline_mode = #tpu.pipeline_mode<synchronous>, transform_indices = @transform_3, window_bounds = array<i64: 64, 32>}, {pipeline_mode = #tpu.pipeline_mode<synchronous>, transform_indices = @transform_4, window_bounds = array<i64: 1, 32>}, {pipeline_mode = #tpu.pipeline_mode<synchronous>, transform_indices = @transform_5, window_bounds = array<i64: 32, 1>}, {pipeline_mode = #tpu.pipeline_mode<synchronous>, transform_indices = @transform_6, window_bounds = array<i64: 1, 1>}, {transform_indices = @transform_7, window_bounds = array<i64: 8, 2>}]} {
    %c0 = arith.constant 0 : index
    %c0_0 = arith.constant 0 : index
    %0 = vector.load %arg1[%c0, %c0_0] : memref<8x4xf32, #tpu.memory_space<vmem>>, vector<8x4xf32>
    %c0_1 = arith.constant 0 : index
    %c0_2 = arith.constant 0 : index
    %1 = vector.load %arg2[%c0_1, %c0_2] : memref<4x64xf32, #tpu.memory_space<vmem>>, vector<4x64xf32>
    %c0_3 = arith.constant 0 : index
    %c0_4 = arith.constant 0 : index
    %2 = vector.load %arg3[%c0_3, %c0_4] : memref<1x64xf32, #tpu.memory_space<vmem>>, vector<1x64xf32>
    %3 = vector.extract_strided_slice %0 {offsets = [0, 0], sizes = [8, 1], strides = [1, 1]} : vector<8x4xf32> to vector<8x1xf32>
    %4 = vector.extract_strided_slice %1 {offsets = [0, 0], sizes = [1, 64], strides = [1, 1]} : vector<4x64xf32> to vector<1x64xf32>
    %5 = vector.broadcast %3 : vector<8x1xf32> to vector<8x64xf32>
    %6 = vector.broadcast %4 : vector<1x64xf32> to vector<8x64xf32>
    %7 = arith.mulf %5, %6 : vector<8x64xf32>
    %8 = vector.broadcast %2 : vector<1x64xf32> to vector<8x64xf32>
    %9 = arith.addf %8, %7 : vector<8x64xf32>
    %10 = vector.extract_strided_slice %0 {offsets = [0, 1], sizes = [8, 1], strides = [1, 1]} : vector<8x4xf32> to vector<8x1xf32>
    %11 = vector.extract_strided_slice %1 {offsets = [1, 0], sizes = [1, 64], strides = [1, 1]} : vector<4x64xf32> to vector<1x64xf32>
    %12 = vector.broadcast %10 : vector<8x1xf32> to vector<8x64xf32>
    %13 = vector.broadcast %11 : vector<1x64xf32> to vector<8x64xf32>
    %14 = arith.mulf %12, %13 : vector<8x64xf32>
    %15 = arith.addf %9, %14 : vector<8x64xf32>
    %16 = vector.extract_strided_slice %0 {offsets = [0, 2], sizes = [8, 1], strides = [1, 1]} : vector<8x4xf32> to vector<8x1xf32>
    %17 = vector.extract_strided_slice %1 {offsets = [2, 0], sizes = [1, 64], strides = [1, 1]} : vector<4x64xf32> to vector<1x64xf32>
    %18 = vector.broadcast %16 : vector<8x1xf32> to vector<8x64xf32>
    %19 = vector.broadcast %17 : vector<1x64xf32> to vector<8x64xf32>
    %20 = arith.mulf %18, %19 : vector<8x64xf32>
    %21 = arith.addf %15, %20 : vector<8x64xf32>
    %22 = vector.extract_strided_slice %0 {offsets = [0, 3], sizes = [8, 1], strides = [1, 1]} : vector<8x4xf32> to vector<8x1xf32>
    %23 = vector.extract_strided_slice %1 {offsets = [3, 0], sizes = [1, 64], strides = [1, 1]} : vector<4x64xf32> to vector<1x64xf32>
    %24 = vector.broadcast %22 : vector<8x1xf32> to vector<8x64xf32>
    %25 = vector.broadcast %23 : vector<1x64xf32> to vector<8x64xf32>
    %26 = arith.mulf %24, %25 : vector<8x64xf32>
    %27 = arith.addf %21, %26 : vector<8x64xf32>
    %cst = arith.constant 0.000000e+00 : f32
    %28 = vector.broadcast %cst : f32 to vector<8x64xf32>
    %29 = arith.maximumf %27, %28 : vector<8x64xf32>
    %30 = arith.truncf %29 : vector<8x64xf32> to vector<8x64xbf16>
    %c0_5 = arith.constant 0 : index
    %c0_6 = arith.constant 0 : index
    %31 = vector.load %arg4[%c0_5, %c0_6] : memref<64x32xf32, #tpu.memory_space<vmem>>, vector<64x32xf32>
    %32 = arith.truncf %31 : vector<64x32xf32> to vector<64x32xbf16>
    %cst_7 = arith.constant dense<0.000000e+00> : vector<8x32xf32>
    %33 = tpu.matmul %30, %32, %cst_7 {dimension_numbers = #tpu.dot_dimension_numbers<[1], [0], [0], [1], [0, 0, 1, 1], [], []>} : vector<8x64xbf16>, vector<64x32xbf16>, vector<8x32xf32> -> vector<8x32xf32>
    %c0_8 = arith.constant 0 : index
    %c0_9 = arith.constant 0 : index
    %34 = vector.load %arg5[%c0_8, %c0_9] : memref<1x32xf32, #tpu.memory_space<vmem>>, vector<1x32xf32>
    %35 = vector.broadcast %34 : vector<1x32xf32> to vector<8x32xf32>
    %36 = arith.addf %33, %35 : vector<8x32xf32>
    %cst_10 = arith.constant 0.000000e+00 : f32
    %37 = vector.broadcast %cst_10 : f32 to vector<8x32xf32>
    %38 = arith.maximumf %36, %37 : vector<8x32xf32>
    %39 = arith.truncf %38 : vector<8x32xf32> to vector<8x32xbf16>
    %c0_11 = arith.constant 0 : index
    %c0_12 = arith.constant 0 : index
    %40 = vector.load %arg6[%c0_11, %c0_12] : memref<32x1xf32, #tpu.memory_space<vmem>>, vector<32x1xf32>
    %41 = arith.truncf %40 : vector<32x1xf32> to vector<32x1xbf16>
    %cst_13 = arith.constant dense<0.000000e+00> : vector<8x1xf32>
    %42 = tpu.matmul %39, %41, %cst_13 {dimension_numbers = #tpu.dot_dimension_numbers<[1], [0], [0], [1], [0, 0, 1, 1], [], []>} : vector<8x32xbf16>, vector<32x1xbf16>, vector<8x1xf32> -> vector<8x1xf32>
    %c0_14 = arith.constant 0 : index
    %c0_15 = arith.constant 0 : index
    %43 = vector.load %arg7[%c0_14, %c0_15] : memref<1x1xf32, #tpu.memory_space<vmem>>, vector<1x1xf32>
    %44 = vector.broadcast %43 : vector<1x1xf32> to vector<8x1xf32>
    %45 = arith.addf %42, %44 : vector<8x1xf32>
    %46 = math.absf %45 : vector<8x1xf32>
    %cst_16 = arith.constant 0.000000e+00 : f32
    %47 = vector.broadcast %cst_16 : f32 to vector<8x1xf32>
    %48 = arith.subf %47, %46 : vector<8x1xf32>
    %49 = math.exp %48 : vector<8x1xf32>
    %cst_17 = arith.constant 1.000000e+00 : f32
    %50 = vector.broadcast %cst_17 : f32 to vector<8x1xf32>
    %51 = arith.addf %50, %49 : vector<8x1xf32>
    %52 = tpu.reciprocal %51 : vector<8x1xf32> -> vector<8x1xf32>
    %cst_18 = arith.constant 0.000000e+00 : f32
    %53 = vector.broadcast %cst_18 : f32 to vector<8x1xf32>
    %54 = arith.cmpf oge, %45, %53 : vector<8x1xf32>
    %55 = arith.mulf %49, %52 : vector<8x1xf32>
    %56 = arith.select %54, %52, %55 : vector<8x1xi1>, vector<8x1xf32>
    %cst_19 = arith.constant 1.000000e+00 : f32
    %57 = vector.broadcast %cst_19 : f32 to vector<8x1xf32>
    %58 = arith.subf %57, %56 : vector<8x1xf32>
    %c0_20 = arith.constant 0 : index
    %c0_21 = arith.constant 0 : index
    %59 = vector.load %arg8[%c0_20, %c0_21] : memref<8x2xf32, #tpu.memory_space<vmem>>, vector<8x1xf32>
    tpu.vector_store %arg8[%c0_20, %c0_21], %58 {strides = array<i32>} : memref<8x2xf32, #tpu.memory_space<vmem>>, vector<8x1xf32>,
    %c0_22 = arith.constant 0 : index
    %c1 = arith.constant 1 : index
    %60 = vector.load %arg8[%c0_22, %c1] : memref<8x2xf32, #tpu.memory_space<vmem>>, vector<8x1xf32>
    tpu.vector_store %arg8[%c0_22, %c1], %56 {strides = array<i32>} : memref<8x2xf32, #tpu.memory_space<vmem>>, vector<8x1xf32>,
    return
  }
  func.func @transform_0(%arg0: i32) -> (i32, i32) {
    %c0_i32 = arith.constant 0 : i32
    %c0_i32_0 = arith.constant 0 : i32
    return %arg0, %c0_i32 : i32, i32
  }
  func.func @transform_1(%arg0: i32) -> (i32, i32) {
    %c0_i32 = arith.constant 0 : i32
    %c0_i32_0 = arith.constant 0 : i32
    %c0_i32_1 = arith.constant 0 : i32
    return %c0_i32, %c0_i32_0 : i32, i32
  }
  func.func @transform_2(%arg0: i32) -> (i32, i32) {
    %c0_i32 = arith.constant 0 : i32
    %c0_i32_0 = arith.constant 0 : i32
    %c0_i32_1 = arith.constant 0 : i32
    return %c0_i32, %c0_i32_0 : i32, i32
  }
  func.func @transform_3(%arg0: i32) -> (i32, i32) {
    %c0_i32 = arith.constant 0 : i32
    %c0_i32_0 = arith.constant 0 : i32
    %c0_i32_1 = arith.constant 0 : i32
    return %c0_i32, %c0_i32_0 : i32, i32
  }
  func.func @transform_4(%arg0: i32) -> (i32, i32) {
    %c0_i32 = arith.constant 0 : i32
    %c0_i32_0 = arith.constant 0 : i32
    %c0_i32_1 = arith.constant 0 : i32
    return %c0_i32, %c0_i32_0 : i32, i32
  }
  func.func @transform_5(%arg0: i32) -> (i32, i32) {
    %c0_i32 = arith.constant 0 : i32
    %c0_i32_0 = arith.constant 0 : i32
    %c0_i32_1 = arith.constant 0 : i32
    return %c0_i32, %c0_i32_0 : i32, i32
  }
  func.func @transform_6(%arg0: i32) -> (i32, i32) {
    %c0_i32 = arith.constant 0 : i32
    %c0_i32_0 = arith.constant 0 : i32
    %c0_i32_1 = arith.constant 0 : i32
    return %c0_i32, %c0_i32_0 : i32, i32
  }
  func.func @transform_7(%arg0: i32) -> (i32, i32) {
    %c0_i32 = arith.constant 0 : i32
    %c0_i32_0 = arith.constant 0 : i32
    return %arg0, %c0_i32 : i32, i32
  }
}

</mosaic_0001>

<bundles_post_ra>
// kernel: quantum_neural_net_forward.1
= control target key start
LH: loop header
LB: loop body
LE: loop exit
PB: predicated region body
PF: predicated region fallthrough
CT: control target
= control target key end

     0   :  { %v274_v0 = vmov 0   ;;  %v275_v2 = vmov 2   ;;  %v276_v6 = vmov 0.0   ;;  %v277_v10 = vmov 1   ;;  %s386_s0 = inlined_call_operand.vmem [shape: f32[8,4], index: 0, kind: input, shape index: {}]   ;;  %s387_s3 = inlined_call_operand.vmem [shape: f32[64,32], index: 3, kind: input, shape index: {}]   ;;  %s388_s1 = inlined_call_operand.vmem [shape: f32[4,64], index: 1, kind: input, shape index: {}]   ;;  %s389_s2 = inlined_call_operand.vmem [shape: f32[1,64], index: 2, kind: input, shape index: {}]   ;;  %s390_s5 = inlined_call_operand.vmem [shape: f32[32,1], index: 5, kind: input, shape index: {}]   ;;  %s391_s6 = inlined_call_operand.<no memory space> [shape: f32[1,1], index: 6, kind: input, shape index: {}]   ;;  %s392_s4 = inlined_call_operand.vmem [shape: f32[1,32], index: 4, kind: input, shape index: {}]   ;;  %s393_s7 = inlined_call_operand.vmem [shape: f32[8,2], index: 7, kind: output, shape index: {}]  }
   0x1   :  { %265 = vset.pattern.permute.xlu0 %v274_v0  ;;  %v29_v1 = vld [vmem:[%s386_s0] sm:$0xff]  ;;  %267 = vset.pattern.permute.xlu1 %v275_v2  ;;  %v87_v3 = vld [vmem:[%s387_s3 + $0x30] sm:$0xff]  ;;  %v88_v4 = vld [vmem:[%s387_s3 + $0x38] sm:$0xff]  ;;  %v278_v11 = vmov 3   ;;  %vm279_vm0 = vmmov 0   ;;  %v37_v18 = vlaneseq  ;;  %vm100_vm1 = vcmask 523264  }
   0x2   :  { %34 = vperm.xlu0 %265, %v29_v1   ;;  %60 = vperm.xlu1 %267, %v29_v1   ;;  %v85_v5 = vld [vmem:[%s387_s3 + $0x20] sm:$0xff]  ;;  %v92_v7 = vpack.c.bf16 %v88_v4, %v87_v3  ;;  %v86_v8 = vld [vmem:[%s387_s3 + $0x28] sm:$0xff]  ;;  %v83_v12 = vld [vmem:[%s387_s3 + $0x10] sm:$0xff]  ;;  %v12_v50 = vstv %s391_s6  ;;  %vm159_vm2 = vcmask 261120   ;;  %vm213_vm4 = vcmask 7168  }
   0x3   :  { %238 = vmatprep.subr.bf16.mxu0 %v276_v6  ;;  %250 = vmatprep.subr.bf16.mxu1 %v276_v6  ;;  %v91_v9 = vpack.c.bf16 %v86_v8, %v85_v5  ;;  %v84_v13 = vld [vmem:[%s387_s3 + $0x18] sm:$0xff]  ;;  %v81_v15 = vld [vmem:[%s387_s3] sm:$0xff]  ;;  %v82_v16 = vld [vmem:[%s387_s3 + $0x8] sm:$0xff]  ;;  %v38_v19 = vshrl.u32 %v37_v18, 7  ;;  %13 = vst [vmem:[#allocation2] sm:$0x1] %v12_v50 }
   0x4   :  { %239 = vmatpush3.bf16.msra.mxu0 %v92_v7  ;;  %v90_v14 = vpack.c.bf16 %v84_v13, %v83_v12  ;;  %v89_v17 = vpack.c.bf16 %v82_v16, %v81_v15  ;;  %246 = vmatprep.mubr.msk.bf16.mxu0 %vm279_vm0, %v276_v6  ;;  %v30_v21 = vld [vmem:[%s388_s1] sm:$0xf]  ;;  %v148_v44 = vld [vmem:[%s390_s5 + $0x10] sm:$0xff]  ;;  %v149_v45 = vld [vmem:[%s390_s5 + $0x18] sm:$0xff]  ;;  %vm219_vm5 = vcmask 15368  }
   0x5   :  { %240 = vmatprep.subr.bf16.mxu0 %v276_v6  ;;  %254 = vmatprep.mubr.msk.bf16.mxu1 %vm279_vm0, %v276_v6  ;;  %v39_v20 = vsub.s32 0, %v38_v19  ;;  %v55_v23 = vsub.s32 1, %v38_v19  ;;  %v65_v25 = vsub.s32 2, %v38_v19  ;;  %v75_v27 = vsub.s32 3, %v38_v19  ;;  %v225_v30 = vld [vmem:[%s389_s2] ss:$0 sm:$0xff] }
   0x6   :  { %266 = vset.pattern.permute.xlu0 %v277_v10  ;;  %268 = vset.pattern.permute.xlu1 %v278_v11  ;;  %v151_v46 = vpack.c.bf16 %v149_v45, %v148_v44  ;;  %v146_v47 = vld [vmem:[%s390_s5] sm:$0xff]  ;;  %v147_v48 = vld [vmem:[%s390_s5 + $0x8] sm:$0xff] }
   0x7   :  { %50 = vperm.xlu0 %266, %v29_v1   ;;  %70 = vperm.xlu1 %268, %v29_v1   ;;  %v40_v22 = vrot.slane %v30_v21, %v39_v20  ;;  %v56_v29 = vrot.slane %v30_v21, %v55_v23  ;;  %v66_v31 = vrot.slane %v30_v21, %v65_v25  ;;  %v226_v51 = vld [vmem:[%s392_s4] ss:$0 sm:$0xff]  ;;  %s280_s4 = smov 1  }
   0x8   :  { %241 = vmatpush3.bf16.msra.mxu0 %v91_v9  ;;  %v76_v32 = vrot.slane %v30_v21, %v75_v27  ;;  %251 = vmatpush3.bf16.msra.mxu1 %v151_v46  ;;  %v150_v49 = vpack.c.bf16 %v147_v48, %v146_v47 }
   0x9   :  { %242 = vmatprep.subr.bf16.mxu0 %v276_v6  ;;  %252 = vmatprep.subr.bf16.mxu1 %v276_v6 }
   0xa   :  { %v228_v59 = vld [vmem:[#allocation2] ss:$0 sm:$0xff] }
   0xb   :  { %269 = vset.pattern.permute.xlu0 %v278_v11 }
   0xc   :  { %243 = vmatpush3.bf16.msra.mxu0 %v90_v14  ;;  %253 = vmatpush3.bf16.msra.mxu1 %v150_v49 }
   0xd   :  { %244 = vmatprep.subr.bf16.mxu0 %v276_v6 }
  0x10   :  { %245 = vmatpush3.bf16.msra.mxu0 %v89_v17 }
  0x7d   :  { %v35_v24 = vpop.permute.xlu0 %34  ;;  %v61_v26 = vpop.permute.xlu1 %60 }
  0x7e   :  { %v41_v28 = vmul.f32 %v40_v22, %v35_v24  ;;  %v67_v37 = vmul.f32 %v66_v31, %v61_v26 }
  0x80   :  { %v48_v35 = vadd.f32 %v225_v30, %v41_v28 }
  0x82   :  { %v51_v33 = vpop.permute.xlu0 %50  ;;  %v71_v34 = vpop.permute.xlu1 %70 }
  0x83   :  { %v57_v36 = vmul.f32 %v56_v29, %v51_v33  ;;  %v77_v39 = vmul.f32 %v76_v32, %v71_v34 }
  0x85   :  { %v58_v38 = vadd.f32 %v57_v36, %v48_v35 }
  0x87   :  { %v68_v40 = vadd.f32 %v67_v37, %v58_v38 }
  0x89   :  { %v78_v41 = vadd.f32 %v77_v39, %v68_v40 }
  0x8b   :  { %v79_v42 = vmax.f32 %v78_v41, 0.0 }
  0x8d   :  { %v80_v43 = vpack.c.bf16 %v79_v42, %v79_v42 }
  0x8f   :  { %247 = vmatmul.mubr.msk.bf16.vlgmr.msra.gmra.mxu0 %vm100_vm1, %v80_v43 }
 0x14f   :  { %v138_v52 = vpop.f32.mrf.mxu0 }
 0x150   :  { %v139_v53 = vadd.f32 %v226_v51, %v138_v52 }
 0x151   :  { %v248_v54 = vpop.f32.mrf.mxu0 }
 0x152   :  { %v144_v55 = vmax.f32 %v139_v53, 0.0 }
 0x153   :  { %v141_v56 = vpop.f32.mrf.mxu0 }
 0x154   :  { %v145_v57 = vpack.c.bf16 %v144_v55, %v144_v55 }
 0x155   :  { %v249_v58 = vpop.f32.mrf.mxu0 }
 0x156   :  { %255 = vmatmul.mubr.msk.bf16.vlgmr.msra.gmra.mxu1 %vm159_vm2, %v145_v57 }
 0x216   :  { %v197_v60 = vpop.f32.mrf.mxu1 }
 0x217   :  { %v198_v61 = vadd.f32 %v228_v59, %v197_v60 }
 0x218   :  { %v256_v62 = vpop.f32.mrf.mxu1 }
 0x219   :  { %v203_v63 = vand.u32 2147483647, %v198_v61  ;;  %vm209_vm3 = vcmp.ge.f32.partialorder %v198_v61, 0.0 }
 0x21a   :  { %v200_v0 = vpop.f32.mrf.mxu1 }
 0x21b   :  { %v204_v1 = vsub.f32 0.0, %v203_v63 }
 0x21c   :  { %v257_v2 = vpop.f32.mrf.mxu1 }
 0x21d   :  { %v205_v3 = vmul.f32 1.442695, %v204_v1 }
 0x21f   :  { %270 = vpow2.f32 %v205_v3 }
 0x22c   :  { %v271_v4 = vpop.eup %270 }
 0x22d   :  { %v207_v5 = vadd.f32 1.0, %v271_v4 }
 0x22f   :  { %272 = vrcp.f32 %v207_v5 }
 0x23c   :  { %v273_v6 = vpop.eup %272 }
 0x23d   :  { %v210_v7 = vmul.f32 %v273_v6, %v271_v4 }
 0x23f   :  { %v211_v8 = vsel %vm209_vm3, %v273_v6, %v210_v7 }
 0x240   :  { %216 = vrot.lane.b32.xlu1 %v211_v8, %s280_s4  ;;  %v212_v9 = vsub.f32 1.0, %v211_v8 }
 0x242   :  { %214 = vst.msk [vmem:[%s393_s7] sm:$0xff] %vm213_vm4, %v212_v9 }
 0x2b2   :  { %v217_v10 = vpop.permute.xlu1 %216 }
 0x2b3   :  { %220 = vst.msk [vmem:[%s393_s7] sm:$0xff] %vm219_vm5, %v217_v10 }

</bundles_post_ra>
